<compile_context>
chip_gen: v7x
topology: tpu7x:2x2x1
jax: 0.10.0
libtpu: 0.0.40
codegen_flags: <defaults>
</compile_context>

<pallas_src>
import math
import functools

import jax
import jax.numpy as jnp
import numpy as np
from jax.experimental import pallas as pl
from jax.experimental.pallas import tpu as pltpu


def _round_up(v, m):
    return ((v + m - 1) // m) * m


def _subam_kernel(x_ref, w_ref, invn_ref, lab_ref, stats_ref,
                  xn_sc, m_sc, l_sc, t_sc,
                  *, cos_m, sin_m, scale, K, n_valid_classes, mask_classes):
    j = pl.program_id(1)                       # class-tile index (innermost)
    nj = pl.num_programs(1)

    @pl.when(j == 0)
    def _():
        # Normalize x once per batch tile (reused by every class tile) and
        # reset the online-logsumexp accumulators.
        x = x_ref[...].astype(jnp.float32)                 # (TB, E_pad)
        eps = 1e-12
        ss = jnp.sum(x * x, axis=1, keepdims=True)         # (TB, 1)
        xn_sc[...] = (x * jax.lax.rsqrt(jnp.maximum(ss, eps * eps))
                      ).astype(xn_sc.dtype)
        m_sc[...] = jnp.full_like(m_sc, -jnp.inf)
        l_sc[...] = jnp.zeros_like(l_sc)
        t_sc[...] = jnp.zeros_like(t_sc)

    xn = xn_sc[...]                                        # (TB, E_pad)
    TB = xn.shape[0]

    # cosine = (xn @ w_k) * (1/||w_k||) per sub-center, max over sub-centers.
    # (inverse norms are applied per sub-center BEFORE the max.)
    cos = None
    for k in range(K):                                     # K small & static
        ck = jnp.dot(xn, w_ref[k], preferred_element_type=jnp.float32)
        ck = ck * invn_ref[k]                              # (TB,TC) * (1,TC)
        cos = ck if cos is None else jnp.maximum(cos, ck)
    TC = cos.shape[1]

    labels = lab_ref[...]                                  # (TB, 1) int32
    c0 = j * TC
    cls_iota = c0 + jax.lax.broadcasted_iota(jnp.int32, (TB, TC), 1)
    is_target = cls_iota == labels

    # Additive-angular-margin math only on the target column ((TB,1) vectors).
    cos_t = jnp.sum(jnp.where(is_target, cos, 0.0), axis=1, keepdims=True)
    sine_t = jnp.sqrt(jnp.clip(1.0 - cos_t * cos_t, 0.0, 1.0))
    phi_t = cos_t * cos_m - sine_t * sin_m
    phi_t = jnp.where(cos_t > 0.0, phi_t, cos_t)

    out = jnp.where(is_target, phi_t, cos) * scale         # (TB, TC)
    if mask_classes:   # statically skipped when n_classes % TC == 0
        out = jnp.where(cls_iota < n_valid_classes, out, -1.0e30)

    # Accumulate the target logit (the target lives in exactly one class tile).
    in_tile = (labels >= c0) & (labels < c0 + TC)          # (TB, 1) bool
    t_sc[...] = t_sc[...] + jnp.where(in_tile, phi_t * scale, 0.0)

    # Online (flash-style) logsumexp across class tiles.
    tile_max = jnp.max(out, axis=1, keepdims=True)         # (TB, 1)
    m_new = jnp.maximum(m_sc[...], tile_max)
    p_sum = jnp.sum(jnp.exp(out - m_new), axis=1, keepdims=True)
    l_sc[...] = l_sc[...] * jnp.exp(m_sc[...] - m_new) + p_sum
    m_sc[...] = m_new

    @pl.when(j == nj - 1)
    def _():
        lse = m_sc[...] + jnp.log(l_sc[...])               # (TB, 1)
        per_row_loss = lse - t_sc[...]                     # (TB, 1)
        # NOTE: ties count as correct (>=) vs torch argmax; documented diff.
        correct = (t_sc[...] >= m_sc[...]).astype(jnp.float32)
        # Lane-dense per-tile stats: col 0 = per-row loss, col 1 = correct.
        lane = jax.lax.broadcasted_iota(jnp.int32, (TB, 128), 1)
        stats_ref[...] = jnp.where(lane == 0, per_row_loss,
                                   jnp.where(lane == 1, correct, 0.0))


def subaam_softmax_loss(x, weight, labels, *, n_classes, k, margin, scale,
                        matmul_dtype=jnp.bfloat16,
                        batch_tile=None, class_tile=None):
    """x: (B, E) f32, weight: (n_classes*k, E) f32, labels: (B,) int.

    Returns (loss scalar, prec1 scalar) — same as the PyTorch module's forward.
    """
    B, E = x.shape
    C, K = n_classes, k
    cos_m = math.cos(margin)
    sin_m = math.sin(margin)
    eps = 1e-12

    # --- Tiling / padding -------------------------------------------------
    E_pad = _round_up(E, 128)
    TC = class_tile if class_tile is not None else min(_round_up(C, 128), 1024)
    assert TC % 128 == 0
    C_pad = _round_up(C, TC)
    n_ct = C_pad // TC

    if batch_tile is not None:
        TB = batch_tile
    else:
        # 256 fills the 256-wide v6e/v7x MXU; harmless on v5e with class tiling.
        TB = 256 if B >= 256 else min(128, _round_up(B, 8))
    assert TB % 8 == 0
    B_pad = _round_up(B, TB)
    n_bt = B_pad // TB
    grid = (n_bt, n_ct)

    # --- Minimal wrapper glue ----------------------------------------------
    # Single pass over the weight: (C*K, E) -> (K, E_pad, C_pad) in matmul
    # dtype, UNNORMALIZED.  The per-(sub-center, class) inverse norms are a
    # tiny (K, 1, C_pad) f32 array applied inside the kernel after the dot.
    w3 = jnp.transpose(weight.reshape(C, K, E), (1, 2, 0))      # (K, E, C)
    w3 = jnp.pad(w3, ((0, 0), (0, E_pad - E), (0, C_pad - C))).astype(matmul_dtype)

    wnorm = jnp.sqrt(jnp.sum(weight.astype(jnp.float32) ** 2, axis=1))   # (C*K,)
    inv = 1.0 / jnp.maximum(wnorm, eps)
    inv3 = inv.reshape(C, K).T.reshape(K, 1, C)
    inv3 = jnp.pad(inv3, ((0, 0), (0, 0), (0, C_pad - C)))      # pad cols -> 0

    x_pad = jnp.pad(x.astype(jnp.float32), ((0, B_pad - B), (0, E_pad - E)))
    labels_2d = jnp.pad(labels.astype(jnp.int32).reshape(B, 1),
                        ((0, B_pad - B), (0, 0)))

    kernel = functools.partial(
        _subam_kernel, cos_m=cos_m, sin_m=sin_m, scale=float(scale),
        K=K, n_valid_classes=C, mask_classes=(C_pad != C))

    # --- VMEM budget (generation-aware) -------------------------------------
    itemsize = jnp.dtype(matmul_dtype).itemsize
    per_step_bytes = (
        2 * K * E_pad * TC * itemsize        # double-buffered weight tile
        + 2 * TB * E_pad * 4                 # x tile
        + 2 * K * TC * 4                     # inverse-norm tile
        + 2 * TB * 4                         # labels tile
        + 2 * TB * 128 * 4                   # stats output tile
        + TB * E_pad * itemsize              # xn scratch
        + 3 * TB * 4                         # m/l/t scratch
        + 6 * TB * TC * 4)                   # in-kernel f32 temporaries
    try:
        vmem_cap = int(pltpu.get_tpu_info().vmem_capacity_bytes)
    except Exception:
        vmem_cap = 64 << 20                  # conservative (v7x per-core)
    vmem_limit = int(min(max(per_step_bytes + (8 << 20), 32 << 20),
                         int(0.85 * vmem_cap)))

    cost = pl.CostEstimate(
        flops=int(2 * K * B_pad * E_pad * C_pad),
        transcendentals=int(B_pad * C_pad),
        bytes_accessed=int(n_bt * K * E_pad * C_pad * itemsize
                           + B_pad * E_pad * 4 + B_pad * 128 * 4
                           + K * C_pad * 4 + B_pad * 4))

    stats = pl.pallas_call(
        kernel,
        out_shape=jax.ShapeDtypeStruct((B_pad, 128), jnp.float32),
        grid=grid,
        in_specs=[
            pl.BlockSpec((TB, E_pad), lambda i, j: (i, 0)),
            pl.BlockSpec((K, E_pad, TC), lambda i, j: (0, 0, j)),
            pl.BlockSpec((K, 1, TC), lambda i, j: (0, 0, j)),
            pl.BlockSpec((TB, 1), lambda i, j: (i, 0)),
        ],
        out_specs=pl.BlockSpec((TB, 128), lambda i, j: (i, 0)),
        scratch_shapes=[
            pltpu.VMEM((TB, E_pad), matmul_dtype),   # normalized x (per batch tile)
            pltpu.VMEM((TB, 1), jnp.float32),        # running max
            pltpu.VMEM((TB, 1), jnp.float32),        # running sum-exp
            pltpu.VMEM((TB, 1), jnp.float32),        # target logit
        ],
        compiler_params=pltpu.CompilerParams(
            dimension_semantics=("parallel", "arbitrary"),
            vmem_limit_bytes=vmem_limit),
        cost_estimate=cost,
    )(x_pad, w3, inv3, labels_2d)

    loss = jnp.sum(stats[:B, 0]) / B
    prec1 = jnp.sum(stats[:B, 1]) / B * 100.0
    return loss, prec1


def _reference(x, weight, labels, *, n_classes, k, margin, scale,
               matmul_dtype=jnp.float32):
    """Plain-JAX reference mirroring the PyTorch forward (matmul-dtype aware)."""
    eps = 1e-12
    ss = jnp.sum(x * x, axis=1, keepdims=True)
    xn = (x * jax.lax.rsqrt(jnp.maximum(ss, eps * eps))).astype(matmul_dtype)
    wn = weight / jnp.maximum(jnp.linalg.norm(weight, axis=1, keepdims=True), eps)
    wn = wn.astype(matmul_dtype)
    cosine = jnp.dot(xn, wn.T, preferred_element_type=jnp.float32)
    cosine = jnp.max(cosine.reshape(-1, n_classes, k), axis=2)
    sine = jnp.sqrt(jnp.clip(1.0 - cosine ** 2, 0.0, 1.0))
    phi = cosine * math.cos(margin) - sine * math.sin(margin)
    phi = jnp.where(cosine > 0, phi, cosine)
    one_hot = jax.nn.one_hot(labels, n_classes, dtype=jnp.float32)
    output = (one_hot * phi + (1.0 - one_hot) * cosine) * scale
    logp = jax.nn.log_softmax(output, axis=1)
    loss = -jnp.mean(jnp.sum(one_hot * logp, axis=1))
    prec1 = jnp.mean(
        (jnp.argmax(output, axis=1) == labels).astype(jnp.float32)) * 100.0
    return loss, prec1


if __name__ == "__main__":
    MARGIN, SCALE = 0.25, 32

    def make_inputs(key, B, E, C, K):
        kx, kw, kl = jax.random.split(key, 3)
        x = jax.random.normal(kx, (B, E), dtype=jnp.float32)
        # xavier_uniform_ for weight (C*K, E)
        bound = math.sqrt(6.0 / (E + C * K))
        weight = jax.random.uniform(kw, (C * K, E), dtype=jnp.float32,
                                    minval=-bound, maxval=bound)
        labels = jax.random.randint(kl, (B,), 0, C, dtype=jnp.int32)
        return x, weight, labels

    # 1) Exact-semantics check (f32 matmul path), single batch/class tile.
    B, E, C, K = 8, 32, 16, 3
    x, w, lab = make_inputs(jax.random.PRNGKey(0), B, E, C, K)
    loss, prec1 = subaam_softmax_loss(x, w, lab, n_classes=C, k=K,
                                      margin=MARGIN, scale=SCALE,
                                      matmul_dtype=jnp.float32)
    jax.block_until_ready((loss, prec1))
    rloss, rprec = _reference(x, w, lab, n_classes=C, k=K, margin=MARGIN,
                              scale=SCALE, matmul_dtype=jnp.float32)
    np.testing.assert_allclose(float(loss), float(rloss), rtol=2e-3, atol=2e-3)
    np.testing.assert_allclose(float(prec1), float(rprec), rtol=1e-3, atol=1e-3)

    # 2) Multi-tile path (f32, tight tolerance): batch padding, class padding
    #    mask, online logsumexp across 2 class tiles, 3 batch tiles.
    B, E, C, K = 20, 48, 200, 3
    x, w, lab = make_inputs(jax.random.PRNGKey(1), B, E, C, K)
    loss, prec1 = subaam_softmax_loss(x, w, lab, n_classes=C, k=K,
                                      margin=MARGIN, scale=SCALE,
                                      matmul_dtype=jnp.float32,
                                      batch_tile=8, class_tile=128)
    jax.block_until_ready((loss, prec1))
    rloss, rprec = _reference(x, w, lab, n_classes=C, k=K, margin=MARGIN,
                              scale=SCALE, matmul_dtype=jnp.float32)
    np.testing.assert_allclose(float(loss), float(rloss), rtol=2e-3, atol=2e-3)
    np.testing.assert_allclose(float(prec1), float(rprec), rtol=1e-3, atol=1e-3)

    # 3) Performance path: bf16 matmul inputs (f32 accumulation) vs a
    #    dtype-consistent reference.  Loss gets a bf16-rounding tolerance;
    #    prec1 gets a one-sample allowance for near-tie argmax flips.
    B, E, C, K = 8, 32, 16, 3
    x, w, lab = make_inputs(jax.random.PRNGKey(0), B, E, C, K)
    loss, prec1 = subaam_softmax_loss(x, w, lab, n_classes=C, k=K,
                                      margin=MARGIN, scale=SCALE,
                                      matmul_dtype=jnp.bfloat16)
    jax.block_until_ready((loss, prec1))
    rloss, rprec = _reference(x, w, lab, n_classes=C, k=K, margin=MARGIN,
                              scale=SCALE, matmul_dtype=jnp.bfloat16)
    np.testing.assert_allclose(float(loss), float(rloss), rtol=3e-2, atol=5e-2)
    np.testing.assert_allclose(float(prec1), float(rprec),
                               rtol=1e-3, atol=100.0 / B + 1e-3)

    print("KERNEL_OK")
</pallas_src>

<mosaic_0001>
module attributes {stable_mosaic.version = 11 : i64} {
  func.func @_subam_kernel(%arg0: i32, %arg1: i32, %arg2: memref<8x128xf32, #tpu.memory_space<vmem>>, %arg3: memref<3x128x128xf32, #tpu.memory_space<vmem>>, %arg4: memref<3x1x128xf32, #tpu.memory_space<vmem>>, %arg5: memref<8x1xi32, #tpu.memory_space<vmem>>, %arg6: memref<8x128xf32, #tpu.memory_space<vmem>>, %arg7: memref<8x128xf32, #tpu.memory_space<vmem>>, %arg8: memref<8x1xf32, #tpu.memory_space<vmem>>, %arg9: memref<8x1xf32, #tpu.memory_space<vmem>>, %arg10: memref<8x1xf32, #tpu.memory_space<vmem>>) attributes {dimension_semantics = [#tpu.dimension_semantics<parallel>, #tpu.dimension_semantics<arbitrary>], iteration_bounds = array<i64: 1, 1>, scalar_prefetch = 0 : i64, scratch_operands = 4 : i64, tpu.core_type = #tpu.core_type<tc>, window_params = [{transform_indices = @transform_0, window_bounds = array<i64: 8, 128>}, {transform_indices = @transform_1, window_bounds = array<i64: 3, 128, 128>}, {transform_indices = @transform_2, window_bounds = array<i64: 3, 1, 128>}, {transform_indices = @transform_3, window_bounds = array<i64: 8, 1>}, {transform_indices = @transform_4, window_bounds = array<i64: 8, 128>}]} {
    %c0_i32 = arith.constant 0 : i32
    %0 = arith.cmpi eq, %arg1, %c0_i32 : i32
    %1 = arith.extui %0 : i1 to i32
    %c0_i32_0 = arith.constant 0 : i32
    %2 = arith.cmpi ne, %1, %c0_i32_0 : i32
    scf.if %2 {
      %c0_53 = arith.constant 0 : index
      %c0_54 = arith.constant 0 : index
      %96 = vector.load %arg2[%c0_53, %c0_54] : memref<8x128xf32, #tpu.memory_space<vmem>>, vector<8x128xf32>
      %97 = arith.mulf %96, %96 : vector<8x128xf32>
      %cst_55 = arith.constant dense<0.000000e+00> : vector<8xf32>
      %98 = vector.multi_reduction <add>, %97, %cst_55 [1] : vector<8x128xf32> to vector<8xf32>
      %99 = vector.shape_cast %98 : vector<8xf32> to vector<8x1xf32>
      %cst_56 = arith.constant 1.000000e-24 : f32
      %100 = vector.broadcast %cst_56 : f32 to vector<8x1xf32>
      %101 = arith.maximumf %99, %100 : vector<8x1xf32>
      %102 = math.rsqrt %101 : vector<8x1xf32>
      %103 = vector.broadcast %102 : vector<8x1xf32> to vector<8x128xf32>
      %104 = arith.mulf %96, %103 : vector<8x128xf32>
      %c0_57 = arith.constant 0 : index
      %c0_58 = arith.constant 0 : index
      %105 = vector.load %arg7[%c0_57, %c0_58] : memref<8x128xf32, #tpu.memory_space<vmem>>, vector<8x128xf32>
      tpu.vector_store %arg7[%c0_57, %c0_58], %104 {strides = array<i32>} : memref<8x128xf32, #tpu.memory_space<vmem>>, vector<8x128xf32>,
      %cst_59 = arith.constant 0xFF800000 : f32
      %106 = vector.broadcast %cst_59 : f32 to vector<8x1xf32>
      %c0_60 = arith.constant 0 : index
      %c0_61 = arith.constant 0 : index
      %107 = vector.load %arg8[%c0_60, %c0_61] : memref<8x1xf32, #tpu.memory_space<vmem>>, vector<8x1xf32>
      tpu.vector_store %arg8[%c0_60, %c0_61], %106 {strides = array<i32>} : memref<8x1xf32, #tpu.memory_space<vmem>>, vector<8x1xf32>,
      %cst_62 = arith.constant 0.000000e+00 : f32
      %108 = vector.broadcast %cst_62 : f32 to vector<8x1xf32>
      %c0_63 = arith.constant 0 : index
      %c0_64 = arith.constant 0 : index
      %109 = vector.load %arg9[%c0_63, %c0_64] : memref<8x1xf32, #tpu.memory_space<vmem>>, vector<8x1xf32>
      tpu.vector_store %arg9[%c0_63, %c0_64], %108 {strides = array<i32>} : memref<8x1xf32, #tpu.memory_space<vmem>>, vector<8x1xf32>,
      %cst_65 = arith.constant 0.000000e+00 : f32
      %110 = vector.broadcast %cst_65 : f32 to vector<8x1xf32>
      %c0_66 = arith.constant 0 : index
      %c0_67 = arith.constant 0 : index
      %111 = vector.load %arg10[%c0_66, %c0_67] : memref<8x1xf32, #tpu.memory_space<vmem>>, vector<8x1xf32>
      tpu.vector_store %arg10[%c0_66, %c0_67], %110 {strides = array<i32>} : memref<8x1xf32, #tpu.memory_space<vmem>>, vector<8x1xf32>,
    } else {
    }
    %c0 = arith.constant 0 : index
    %c0_1 = arith.constant 0 : index
    %3 = vector.load %arg7[%c0, %c0_1] : memref<8x128xf32, #tpu.memory_space<vmem>>, vector<8x128xf32>
    %c0_2 = arith.constant 0 : index
    %c0_3 = arith.constant 0 : index
    %c0_4 = arith.constant 0 : index
    %4 = vector.load %arg3[%c0_2, %c0_3, %c0_4] : memref<3x128x128xf32, #tpu.memory_space<vmem>>, vector<1x128x128xf32>
    %5 = vector.shape_cast %4 : vector<1x128x128xf32> to vector<128x128xf32>
    %cst = arith.constant dense<0.000000e+00> : vector<8x128xf32>
    %6 = tpu.matmul %3, %5, %cst {dimension_numbers = #tpu.dot_dimension_numbers<[1], [0], [0], [1], [0, 0, 1, 1], [], []>} : vector<8x128xf32>, vector<128x128xf32>, vector<8x128xf32> -> vector<8x128xf32>
    %c0_5 = arith.constant 0 : index
    %c0_6 = arith.constant 0 : index
    %c0_7 = arith.constant 0 : index
    %7 = vector.load %arg4[%c0_5, %c0_6, %c0_7] : memref<3x1x128xf32, #tpu.memory_space<vmem>>, vector<1x1x128xf32>
    %8 = vector.shape_cast %7 : vector<1x1x128xf32> to vector<1x128xf32>
    %9 = vector.broadcast %8 : vector<1x128xf32> to vector<8x128xf32>
    %10 = arith.mulf %6, %9 : vector<8x128xf32>
    %c1 = arith.constant 1 : index
    %c0_8 = arith.constant 0 : index
    %c0_9 = arith.constant 0 : index
    %11 = vector.load %arg3[%c1, %c0_8, %c0_9] : memref<3x128x128xf32, #tpu.memory_space<vmem>>, vector<1x128x128xf32>
    %12 = vector.shape_cast %11 : vector<1x128x128xf32> to vector<128x128xf32>
    %cst_10 = arith.constant dense<0.000000e+00> : vector<8x128xf32>
    %13 = tpu.matmul %3, %12, %cst_10 {dimension_numbers = #tpu.dot_dimension_numbers<[1], [0], [0], [1], [0, 0, 1, 1], [], []>} : vector<8x128xf32>, vector<128x128xf32>, vector<8x128xf32> -> vector<8x128xf32>
    %c1_11 = arith.constant 1 : index
    %c0_12 = arith.constant 0 : index
    %c0_13 = arith.constant 0 : index
    %14 = vector.load %arg4[%c1_11, %c0_12, %c0_13] : memref<3x1x128xf32, #tpu.memory_space<vmem>>, vector<1x1x128xf32>
    %15 = vector.shape_cast %14 : vector<1x1x128xf32> to vector<1x128xf32>
    %16 = vector.broadcast %15 : vector<1x128xf32> to vector<8x128xf32>
    %17 = arith.mulf %13, %16 : vector<8x128xf32>
    %18 = arith.maximumf %10, %17 : vector<8x128xf32>
    %c2 = arith.constant 2 : index
    %c0_14 = arith.constant 0 : index
    %c0_15 = arith.constant 0 : index
    %19 = vector.load %arg3[%c2, %c0_14, %c0_15] : memref<3x128x128xf32, #tpu.memory_space<vmem>>, vector<1x128x128xf32>
    %20 = vector.shape_cast %19 : vector<1x128x128xf32> to vector<128x128xf32>
    %cst_16 = arith.constant dense<0.000000e+00> : vector<8x128xf32>
    %21 = tpu.matmul %3, %20, %cst_16 {dimension_numbers = #tpu.dot_dimension_numbers<[1], [0], [0], [1], [0, 0, 1, 1], [], []>} : vector<8x128xf32>, vector<128x128xf32>, vector<8x128xf32> -> vector<8x128xf32>
    %c2_17 = arith.constant 2 : index
    %c0_18 = arith.constant 0 : index
    %c0_19 = arith.constant 0 : index
    %22 = vector.load %arg4[%c2_17, %c0_18, %c0_19] : memref<3x1x128xf32, #tpu.memory_space<vmem>>, vector<1x1x128xf32>
    %23 = vector.shape_cast %22 : vector<1x1x128xf32> to vector<1x128xf32>
    %24 = vector.broadcast %23 : vector<1x128xf32> to vector<8x128xf32>
    %25 = arith.mulf %21, %24 : vector<8x128xf32>
    %26 = arith.maximumf %18, %25 : vector<8x128xf32>
    %c0_20 = arith.constant 0 : index
    %c0_21 = arith.constant 0 : index
    %27 = vector.load %arg5[%c0_20, %c0_21] : memref<8x1xi32, #tpu.memory_space<vmem>>, vector<8x1xi32>
    %c128_i32 = arith.constant 128 : i32
    %28 = arith.muli %arg1, %c128_i32 : i32
    %29 = tpu.iota {dimensions = array<i32: 1>} : vector<8x128xi32>
    %30 = vector.broadcast %28 : i32 to vector<8x128xi32>
    %31 = arith.addi %30, %29 : vector<8x128xi32>
    %32 = vector.broadcast %27 : vector<8x1xi32> to vector<8x128xi32>
    %33 = arith.cmpi eq, %31, %32 : vector<8x128xi32>
    %cst_22 = arith.constant 0.000000e+00 : f32
    %34 = vector.broadcast %cst_22 : f32 to vector<8x128xf32>
    %35 = arith.select %33, %26, %34 : vector<8x128xi1>, vector<8x128xf32>
    %cst_23 = arith.constant dense<0.000000e+00> : vector<8xf32>
    %36 = vector.multi_reduction <add>, %35, %cst_23 [1] : vector<8x128xf32> to vector<8xf32>
    %37 = vector.shape_cast %36 : vector<8xf32> to vector<8x1xf32>
    %38 = arith.mulf %37, %37 : vector<8x1xf32>
    %cst_24 = arith.constant 1.000000e+00 : f32
    %39 = vector.broadcast %cst_24 : f32 to vector<8x1xf32>
    %40 = arith.subf %39, %38 : vector<8x1xf32>
    %cst_25 = arith.constant 0.000000e+00 : f32
    %cst_26 = arith.constant 1.000000e+00 : f32
    %41 = vector.broadcast %cst_25 : f32 to vector<8x1xf32>
    %42 = arith.maximumf %41, %40 : vector<8x1xf32>
    %43 = vector.broadcast %cst_26 : f32 to vector<8x1xf32>
    %44 = arith.minimumf %43, %42 : vector<8x1xf32>
    %45 = math.sqrt %44 : vector<8x1xf32>
    %cst_27 = arith.constant 0.968912422 : f32
    %46 = vector.broadcast %cst_27 : f32 to vector<8x1xf32>
    %47 = arith.mulf %37, %46 : vector<8x1xf32>
    %cst_28 = arith.constant 0.247403964 : f32
    %48 = vector.broadcast %cst_28 : f32 to vector<8x1xf32>
    %49 = arith.mulf %45, %48 : vector<8x1xf32>
    %50 = arith.subf %47, %49 : vector<8x1xf32>
    %cst_29 = arith.constant 0.000000e+00 : f32
    %51 = vector.broadcast %cst_29 : f32 to vector<8x1xf32>
    %52 = arith.cmpf ogt, %37, %51 : vector<8x1xf32>
    %53 = arith.select %52, %50, %37 : vector<8x1xi1>, vector<8x1xf32>
    %54 = vector.shape_cast %53 : vector<8x1xf32> to vector<8x1xf32>
    %55 = vector.broadcast %54 : vector<8x1xf32> to vector<8x128xf32>
    %56 = arith.select %33, %55, %26 : vector<8x128xi1>, vector<8x128xf32>
    %cst_30 = arith.constant 3.200000e+01 : f32
    %57 = vector.broadcast %cst_30 : f32 to vector<8x128xf32>
    %58 = arith.mulf %56, %57 : vector<8x128xf32>
    %c16_i32 = arith.constant 16 : i32
    %59 = vector.broadcast %c16_i32 : i32 to vector<8x128xi32>
    %60 = arith.cmpi slt, %31, %59 : vector<8x128xi32>
    %cst_31 = arith.constant -1.000000e+30 : f32
    %61 = vector.broadcast %cst_31 : f32 to vector<8x128xf32>
    %62 = arith.select %60, %58, %61 : vector<8x128xi1>, vector<8x128xf32>
    %63 = vector.broadcast %28 : i32 to vector<8x1xi32>
    %64 = arith.cmpi sge, %27, %63 : vector<8x1xi32>
    %c128_i32_32 = arith.constant 128 : i32
    %65 = arith.addi %28, %c128_i32_32 : i32
    %66 = vector.broadcast %65 : i32 to vector<8x1xi32>
    %67 = arith.cmpi slt, %27, %66 : vector<8x1xi32>
    %68 = arith.andi %64, %67 : vector<8x1xi1>
    %c0_33 = arith.constant 0 : index
    %c0_34 = arith.constant 0 : index
    %69 = vector.load %arg10[%c0_33, %c0_34] : memref<8x1xf32, #tpu.memory_space<vmem>>, vector<8x1xf32>
    %cst_35 = arith.constant 3.200000e+01 : f32
    %70 = vector.broadcast %cst_35 : f32 to vector<8x1xf32>
    %71 = arith.mulf %53, %70 : vector<8x1xf32>
    %cst_36 = arith.constant 0.000000e+00 : f32
    %72 = vector.broadcast %cst_36 : f32 to vector<8x1xf32>
    %73 = arith.select %68, %71, %72 : vector<8x1xi1>, vector<8x1xf32>
    %74 = arith.addf %69, %73 : vector<8x1xf32>
    %c0_37 = arith.constant 0 : index
    %c0_38 = arith.constant 0 : index
    %75 = vector.load %arg10[%c0_37, %c0_38] : memref<8x1xf32, #tpu.memory_space<vmem>>, vector<8x1xf32>
    tpu.vector_store %arg10[%c0_37, %c0_38], %74 {strides = array<i32>} : memref<8x1xf32, #tpu.memory_space<vmem>>, vector<8x1xf32>,
    %cst_39 = arith.constant dense<0xFF800000> : vector<8xf32>
    %76 = vector.multi_reduction <maximumf>, %62, %cst_39 [1] : vector<8x128xf32> to vector<8xf32>
    %77 = vector.shape_cast %76 : vector<8xf32> to vector<8x1xf32>
    %c0_40 = arith.constant 0 : index
    %c0_41 = arith.constant 0 : index
    %78 = vector.load %arg8[%c0_40, %c0_41] : memref<8x1xf32, #tpu.memory_space<vmem>>, vector<8x1xf32>
    %79 = arith.maximumf %78, %77 : vector<8x1xf32>
    %80 = vector.broadcast %79 : vector<8x1xf32> to vector<8x128xf32>
    %81 = arith.subf %62, %80 : vector<8x128xf32>
    %82 = math.exp %81 : vector<8x128xf32>
    %cst_42 = arith.constant dense<0.000000e+00> : vector<8xf32>
    %83 = vector.multi_reduction <add>, %82, %cst_42 [1] : vector<8x128xf32> to vector<8xf32>
    %84 = vector.shape_cast %83 : vector<8xf32> to vector<8x1xf32>
    %c0_43 = arith.constant 0 : index
    %c0_44 = arith.constant 0 : index
    %85 = vector.load %arg9[%c0_43, %c0_44] : memref<8x1xf32, #tpu.memory_space<vmem>>, vector<8x1xf32>
    %c0_45 = arith.constant 0 : index
    %c0_46 = arith.constant 0 : index
    %86 = vector.load %arg8[%c0_45, %c0_46] : memref<8x1xf32, #tpu.memory_space<vmem>>, vector<8x1xf32>
    %87 = arith.subf %86, %79 : vector<8x1xf32>
    %88 = math.exp %87 : vector<8x1xf32>
    %89 = arith.mulf %85, %88 : vector<8x1xf32>
    %90 = arith.addf %89, %84 : vector<8x1xf32>
    %c0_47 = arith.constant 0 : index
    %c0_48 = arith.constant 0 : index
    %91 = vector.load %arg9[%c0_47, %c0_48] : memref<8x1xf32, #tpu.memory_space<vmem>>, vector<8x1xf32>
    tpu.vector_store %arg9[%c0_47, %c0_48], %90 {strides = array<i32>} : memref<8x1xf32, #tpu.memory_space<vmem>>, vector<8x1xf32>,
    %c0_49 = arith.constant 0 : index
    %c0_50 = arith.constant 0 : index
    %92 = vector.load %arg8[%c0_49, %c0_50] : memref<8x1xf32, #tpu.memory_space<vmem>>, vector<8x1xf32>
    tpu.vector_store %arg8[%c0_49, %c0_50], %79 {strides = array<i32>} : memref<8x1xf32, #tpu.memory_space<vmem>>, vector<8x1xf32>,
    %c0_i32_51 = arith.constant 0 : i32
    %93 = arith.cmpi eq, %arg1, %c0_i32_51 : i32
    %94 = arith.extui %93 : i1 to i32
    %c0_i32_52 = arith.constant 0 : i32
    %95 = arith.cmpi ne, %94, %c0_i32_52 : i32
    scf.if %95 {
      %c0_53 = arith.constant 0 : index
      %c0_54 = arith.constant 0 : index
      %96 = vector.load %arg8[%c0_53, %c0_54] : memref<8x1xf32, #tpu.memory_space<vmem>>, vector<8x1xf32>
      %c0_55 = arith.constant 0 : index
      %c0_56 = arith.constant 0 : index
      %97 = vector.load %arg9[%c0_55, %c0_56] : memref<8x1xf32, #tpu.memory_space<vmem>>, vector<8x1xf32>
      %98 = math.log %97 : vector<8x1xf32>
      %99 = arith.addf %96, %98 : vector<8x1xf32>
      %c0_57 = arith.constant 0 : index
      %c0_58 = arith.constant 0 : index
      %100 = vector.load %arg10[%c0_57, %c0_58] : memref<8x1xf32, #tpu.memory_space<vmem>>, vector<8x1xf32>
      %101 = arith.subf %99, %100 : vector<8x1xf32>
      %c0_59 = arith.constant 0 : index
      %c0_60 = arith.constant 0 : index
      %102 = vector.load %arg10[%c0_59, %c0_60] : memref<8x1xf32, #tpu.memory_space<vmem>>, vector<8x1xf32>
      %c0_61 = arith.constant 0 : index
      %c0_62 = arith.constant 0 : index
      %103 = vector.load %arg8[%c0_61, %c0_62] : memref<8x1xf32, #tpu.memory_space<vmem>>, vector<8x1xf32>
      %104 = arith.cmpf oge, %102, %103 : vector<8x1xf32>
      %105 = arith.extui %104 : vector<8x1xi1> to vector<8x1xi32>
      %106 = arith.sitofp %105 : vector<8x1xi32> to vector<8x1xf32>
      %107 = tpu.iota {dimensions = array<i32: 1>} : vector<8x128xi32>
      %c0_i32_63 = arith.constant 0 : i32
      %108 = vector.broadcast %c0_i32_63 : i32 to vector<8x128xi32>
      %109 = arith.cmpi eq, %107, %108 : vector<8x128xi32>
      %c1_i32 = arith.constant 1 : i32
      %110 = vector.broadcast %c1_i32 : i32 to vector<8x128xi32>
      %111 = arith.cmpi eq, %107, %110 : vector<8x128xi32>
      %cst_64 = arith.constant 0.000000e+00 : f32
      %112 = vector.shape_cast %106 : vector<8x1xf32> to vector<8x1xf32>
      %113 = vector.broadcast %112 : vector<8x1xf32> to vector<8x128xf32>
      %114 = vector.broadcast %cst_64 : f32 to vector<8x128xf32>
      %115 = arith.select %111, %113, %114 : vector<8x128xi1>, vector<8x128xf32>
      %116 = vector.shape_cast %101 : vector<8x1xf32> to vector<8x1xf32>
      %117 = vector.broadcast %116 : vector<8x1xf32> to vector<8x128xf32>
      %118 = arith.select %109, %117, %115 : vector<8x128xi1>, vector<8x128xf32>
      %c0_65 = arith.constant 0 : index
      %c0_66 = arith.constant 0 : index
      %119 = vector.load %arg6[%c0_65, %c0_66] : memref<8x128xf32, #tpu.memory_space<vmem>>, vector<8x128xf32>
      tpu.vector_store %arg6[%c0_65, %c0_66], %118 {strides = array<i32>} : memref<8x128xf32, #tpu.memory_space<vmem>>, vector<8x128xf32>,
    } else {
    }
    return
  }
  func.func @transform_0(%arg0: i32, %arg1: i32) -> (i32, i32) {
    %c0_i32 = arith.constant 0 : i32
    %c0_i32_0 = arith.constant 0 : i32
    return %arg0, %c0_i32 : i32, i32
  }
  func.func @transform_1(%arg0: i32, %arg1: i32) -> (i32, i32, i32) {
    %c0_i32 = arith.constant 0 : i32
    %c0_i32_0 = arith.constant 0 : i32
    %c0_i32_1 = arith.constant 0 : i32
    return %c0_i32, %c0_i32_0, %arg1 : i32, i32, i32
  }
  func.func @transform_2(%arg0: i32, %arg1: i32) -> (i32, i32, i32) {
    %c0_i32 = arith.constant 0 : i32
    %c0_i32_0 = arith.constant 0 : i32
    %c0_i32_1 = arith.constant 0 : i32
    return %c0_i32, %c0_i32_0, %arg1 : i32, i32, i32
  }
  func.func @transform_3(%arg0: i32, %arg1: i32) -> (i32, i32) {
    %c0_i32 = arith.constant 0 : i32
    %c0_i32_0 = arith.constant 0 : i32
    return %arg0, %c0_i32 : i32, i32
  }
  func.func @transform_4(%arg0: i32, %arg1: i32) -> (i32, i32) {
    %c0_i32 = arith.constant 0 : i32
    %c0_i32_0 = arith.constant 0 : i32
    return %arg0, %c0_i32 : i32, i32
  }
}

</mosaic_0001>

<bundles_post_ra>
// kernel: tpu_custom_call.1
= control target key start
LH: loop header
LB: loop body
LE: loop exit
PB: predicated region body
PF: predicated region fallthrough
CT: control target
= control target key end

     0   :  { %9 = vsyncpa [#allocation7], 0  ;;  %s881_s0 = inlined_call_operand.vmem [shape: f32[8,128], index: 0, kind: input, shape index: {}]   ;;  %s882_s1 = inlined_call_operand.hbm [shape: f32[3,128,128], index: 1, kind: input, shape index: {}]   ;;  %s883_s2 = inlined_call_operand.vmem [shape: f32[3,1,128], index: 2, kind: input, shape index: {}]   ;;  %s884_s3 = inlined_call_operand.vmem [shape: s32[8,1], index: 3, kind: input, shape index: {}]   ;;  %s885_s4 = inlined_call_operand.hbm [shape: f32[8,128], index: 4, kind: output, shape index: {}]  }
   0x1   :  { %10 = vsyncpa [#allocation8], 0  ;;  %s749_s15 = smov [#allocation6]   ;;  %s701_s19 = scalar_lea.hbm %s882_s1, 6144 }
   0x2   :  { %s18_s16 = sshll.u32 %s749_s15, 4  ;;  %p702_p0 = scmp.ne.s32.totalorder %s882_s1, %s701_s19  ;;  %s19_s16 = int_to_ptr.vmem [resolvable:$true] %s18_s16 }
   0x3   :  { %p705_p1 = scmp.lt.u32.totalorder %s701_s19, %s882_s1 }
   0x5   :  { %p707_p2 = pnand %p705_p1, %p702_p0 }
   0x7   :  { %710 = shalt.err (!%p707_p2)
}
   0x8   :  { %s711_s24 = scalar_lea.vmem %s19_s16, 6144  ;;  %p716_p4 = scmp.lt.s32.totalorder %s19_s16, %s19_s16 }
   0x9   :  { %p712_p3 = scmp.ne.s32.totalorder %s19_s16, %s711_s24  ;;  %p717_p5 = scmp.lt.s32.totalorder %s711_s24, %s711_s24 }
   0xb   :  { %p718_p6 = por %p717_p5, %p716_p4 }
   0xd   :  { %p719_p7 = pnand %p718_p6, %p712_p3 }
   0xf   :  { %722 = shalt.err (!%p719_p7)
}
  0x10   :  { %s750_s25 = smov 128   ;;  %s751_s26 = smov 8  }
  0x11   :  { %24 = dma.hbm_to_vmem [thread:$0]  %s882_s1, 6144, %s19_s16, [#allocation7], %s750_s25, %s750_s25, %s751_s26  }
  0x12   :  { %745 = dma.done.wait [#allocation7], 6144  }
  0x13   :  { %746 = vsyncadd [#allocation7], 4294961152  ;;  %v752_v0 = vmov 0.0|0.0   ;;  %v800_v1 = vld [vmem:[%s881_s0] sm:$0xff]  ;;  %v49_v2 = vld [vmem:[#allocation6] sm:$0xff]  ;;  %vm44_vm0 = vcmask 7168  }
  0x14   :  { %608 = vmatprep.subr.bf16.mxu0 %v752_v0  ;;  %632 = vmatprep.subr.bf16.mxu1 %v752_v0  ;;  %v50_v3 = vld [vmem:[#allocation6 + $0x8] sm:$0xff]  ;;  %v37_v4 = vmul.f32 %v800_v1, %v800_v1  ;;  %v144_v6 = vld [vmem:[#allocation6 + $0x80] sm:$0xff]  ;;  %v51_v8 = vld [vmem:[#allocation6 + $0x10] sm:$0xff]  ;;  %v753_v41 = vmov 0.0   ;;  %vm754_vm1 = vmmov 0   ;;  %v755_v53 = vmov 0  }
  0x15   :  { %v609_v5 = vpack.c.bf16 %v50_v3, %v49_v2  ;;  %v145_v7 = vld [vmem:[#allocation6 + $0x88] sm:$0xff]  ;;  %v52_v10 = vld [vmem:[#allocation6 + $0x18] sm:$0xff]  ;;  %v146_v11 = vld [vmem:[#allocation6 + $0x90] sm:$0xff]  ;;  %47 = vst.msk [vmem:[#allocation5] sm:$0xff] %vm44_vm0, %v753_v41  ;;  %535 = vmatprep.mubr.msk.f32.mxu0 %vm754_vm1, %v753_v41  ;;  %570 = vmatprep.mubr.msk.f32.mxu1 %vm754_vm1, %v753_v41 }
  0x16   :  { %v633_v9 = vpack.c.bf16 %v145_v7, %v144_v6  ;;  %v147_v12 = vld [vmem:[#allocation6 + $0x98] sm:$0xff]  ;;  %38 = vadd.xlane.f32.xlu0 %v37_v4  ;;  %v612_v13 = vpack.c.bf16 %v52_v10, %v51_v8  ;;  %v53_v15 = vld [vmem:[#allocation6 + $0x20] sm:$0xff]  ;;  %v54_v16 = vld [vmem:[#allocation6 + $0x28] sm:$0xff]  ;;  %46 = vst.msk [vmem:[#allocation4] sm:$0xff] %vm44_vm0, %v753_v41  ;;  %690 = vset.pattern.permute.xlu1 %v755_v53 }
  0x17   :  { %610 = vmatpush3.bf16.msra.mxu0 %v609_v5  ;;  %v636_v14 = vpack.c.bf16 %v147_v12, %v146_v11  ;;  %v148_v17 = vld [vmem:[#allocation6 + $0xa0] sm:$0xff]  ;;  %v149_v18 = vld [vmem:[#allocation6 + $0xa8] sm:$0xff]  ;;  %v615_v19 = vpack.c.bf16 %v54_v16, %v53_v15  ;;  %v55_v21 = vld [vmem:[#allocation6 + $0x30] sm:$0xff]  ;;  %689 = vset.pattern.permute.xlu0 %v755_v53 }
  0x18   :  { %634 = vmatpush3.bf16.msra.mxu1 %v633_v9  ;;  %611 = vmatprep.subr.bf16.mxu0 %v752_v0  ;;  %v639_v20 = vpack.c.bf16 %v149_v18, %v148_v17  ;;  %v56_v22 = vld [vmem:[#allocation6 + $0x38] sm:$0xff]  ;;  %v150_v23 = vld [vmem:[#allocation6 + $0xb0] sm:$0xff]  ;;  %v57_v27 = vld [vmem:[#allocation6 + $0x40] sm:$0xff] }
  0x19   :  { %635 = vmatprep.subr.bf16.mxu1 %v752_v0  ;;  %v151_v24 = vld [vmem:[#allocation6 + $0xb8] sm:$0xff]  ;;  %v618_v25 = vpack.c.bf16 %v56_v22, %v55_v21  ;;  %v58_v28 = vld [vmem:[#allocation6 + $0x48] sm:$0xff]  ;;  %v152_v29 = vld [vmem:[#allocation6 + $0xc0] sm:$0xff] }
  0x1a   :  { %v642_v26 = vpack.c.bf16 %v151_v24, %v150_v23  ;;  %v153_v30 = vld [vmem:[#allocation6 + $0xc8] sm:$0xff]  ;;  %v621_v31 = vpack.c.bf16 %v58_v28, %v57_v27  ;;  %v59_v33 = vld [vmem:[#allocation6 + $0x50] sm:$0xff]  ;;  %v60_v34 = vld [vmem:[#allocation6 + $0x58] sm:$0xff]  ;;  %v339_v28 = vlaneseq }
  0x1b   :  { %613 = vmatpush3.bf16.msra.mxu0 %v612_v13  ;;  %v645_v32 = vpack.c.bf16 %v153_v30, %v152_v29  ;;  %v154_v35 = vld [vmem:[#allocation6 + $0xd0] sm:$0xff]  ;;  %v155_v36 = vld [vmem:[#allocation6 + $0xd8] sm:$0xff]  ;;  %v624_v37 = vpack.c.bf16 %v60_v34, %v59_v33  ;;  %v61_v39 = vld [vmem:[#allocation6 + $0x60] sm:$0xff] }
  0x1c   :  { %637 = vmatpush3.bf16.msra.mxu1 %v636_v14  ;;  %614 = vmatprep.subr.bf16.mxu0 %v752_v0  ;;  %v648_v38 = vpack.c.bf16 %v155_v36, %v154_v35  ;;  %v62_v40 = vld [vmem:[#allocation6 + $0x68] sm:$0xff]  ;;  %v156_v42 = vld [vmem:[#allocation6 + $0xe0] sm:$0xff]  ;;  %v63_v46 = vld [vmem:[#allocation6 + $0x70] sm:$0xff]  ;;  %v852_v29 = vand.u32 127, %v339_v28  ;;  %v756_v36 = vmov -inf  }
  0x1d   :  { %638 = vmatprep.subr.bf16.mxu1 %v752_v0  ;;  %v157_v43 = vld [vmem:[#allocation6 + $0xe8] sm:$0xff]  ;;  %v627_v44 = vpack.c.bf16 %v62_v40, %v61_v39  ;;  %v64_v47 = vld [vmem:[#allocation6 + $0x78] sm:$0xff]  ;;  %v158_v48 = vld [vmem:[#allocation6 + $0xf0] sm:$0xff]  ;;  %45 = vst.msk [vmem:[#allocation3] sm:$0xff] %vm44_vm0, %v756_v36 }
  0x1e   :  { %v651_v45 = vpack.c.bf16 %v157_v43, %v156_v42  ;;  %v159_v49 = vld [vmem:[#allocation6 + $0xf8] sm:$0xff]  ;;  %v630_v50 = vpack.c.bf16 %v64_v47, %v63_v46  ;;  %v830_v52 = vld [vmem:[%s884_s3] sm:$0xff]  ;;  %v241_v56 = vld [vmem:[#allocation6 + $0x100] sm:$0xff]  ;;  %vm368_vm9 = vcmp.lt.s32.totalorder %v852_v29, 16  ;;  %vm417_vm11 = vcmp.eq.s32.totalorder %v852_v29, 1 }
  0x1f   :  { %616 = vmatpush3.bf16.msra.mxu0 %v615_v19  ;;  %v654_v51 = vpack.c.bf16 %v159_v49, %v158_v48  ;;  %v242_v57 = vld [vmem:[#allocation6 + $0x108] sm:$0xff]  ;;  %v243_v61 = vld [vmem:[#allocation6 + $0x110] sm:$0xff]  ;;  %v244_v62 = vld [vmem:[#allocation6 + $0x118] sm:$0xff]  ;;  %vm370_vm5 = vcmp.ge.s32.totalorder %v830_v52, 0  ;;  %vm373_vm6 = vcmp.lt.s32.totalorder %v830_v52, 128  ;;  %vm416_vm12 = vcmp.eq.s32.totalorder %v852_v29, 0 }
  0x20   :  { %640 = vmatpush3.bf16.msra.mxu1 %v639_v20  ;;  %617 = vmatprep.subr.bf16.mxu0 %v752_v0  ;;  %v657_v59 = vpack.c.bf16 %v242_v57, %v241_v56  ;;  %v660_v63 = vpack.c.bf16 %v244_v62, %v243_v61  ;;  %v245_v2 = vld [vmem:[#allocation6 + $0x120] sm:$0xff]  ;;  %v246_v3 = vld [vmem:[#allocation6 + $0x128] sm:$0xff]  ;;  %v247_v5 = vld [vmem:[#allocation6 + $0x130] sm:$0xff] }
  0x21   :  { %641 = vmatprep.subr.bf16.mxu1 %v752_v0  ;;  %v663_v4 = vpack.c.bf16 %v246_v3, %v245_v2  ;;  %v248_v6 = vld [vmem:[#allocation6 + $0x138] sm:$0xff]  ;;  %v249_v7 = vld [vmem:[#allocation6 + $0x140] sm:$0xff]  ;;  %v250_v8 = vld [vmem:[#allocation6 + $0x148] sm:$0xff] }
  0x22   :  { %v669_v9 = vpack.c.bf16 %v250_v8, %v249_v7  ;;  %v251_v10 = vld [vmem:[#allocation6 + $0x150] sm:$0xff]  ;;  %v252_v11 = vld [vmem:[#allocation6 + $0x158] sm:$0xff]  ;;  %v253_v13 = vld [vmem:[#allocation6 + $0x160] sm:$0xff] }
  0x23   :  { %619 = vmatpush3.bf16.msra.mxu0 %v618_v25  ;;  %v672_v12 = vpack.c.bf16 %v252_v11, %v251_v10  ;;  %v254_v14 = vld [vmem:[#allocation6 + $0x168] sm:$0xff]  ;;  %v255_v16 = vld [vmem:[#allocation6 + $0x170] sm:$0xff]  ;;  %v256_v17 = vld [vmem:[#allocation6 + $0x178] sm:$0xff] }
  0x24   :  { %643 = vmatpush3.bf16.msra.mxu1 %v642_v26  ;;  %620 = vmatprep.subr.bf16.mxu0 %v752_v0  ;;  %v675_v15 = vpack.c.bf16 %v254_v14, %v253_v13  ;;  %v678_v18 = vpack.c.bf16 %v256_v17, %v255_v16  ;;  %v446_v19 = vld [vmem:[%s883_s2] ss:$0 sm:$0xff]  ;;  %v448_v20 = vld [vmem:[%s883_s2 + $0x1] ss:$0 sm:$0xff]  ;;  %vm374_vm8 = vmand %vm370_vm5, %vm373_vm6 }
  0x25   :  { %644 = vmatprep.subr.bf16.mxu1 %v752_v0 }
  0x27   :  { %622 = vmatpush3.bf16.msra.mxu0 %v621_v31 }
  0x28   :  { %646 = vmatpush3.bf16.msra.mxu1 %v645_v32  ;;  %623 = vmatprep.subr.bf16.mxu0 %v752_v0 }
  0x29   :  { %647 = vmatprep.subr.bf16.mxu1 %v752_v0 }
  0x2b   :  { %625 = vmatpush3.bf16.msra.mxu0 %v624_v37 }
  0x2c   :  { %649 = vmatpush3.bf16.msra.mxu1 %v648_v38  ;;  %626 = vmatprep.subr.bf16.mxu0 %v752_v0 }
  0x2d   :  { %650 = vmatprep.subr.bf16.mxu1 %v752_v0  ;;  %344 = vperm.xlu0 %689, %v830_v52  }
  0x2f   :  { %628 = vmatpush3.bf16.msra.mxu0 %v627_v44 }
  0x30   :  { %652 = vmatpush3.bf16.msra.mxu1 %v651_v45  ;;  %629 = vmatprep.subr.bf16.mxu0 %v752_v0 }
  0x31   :  { %653 = vmatprep.subr.bf16.mxu1 %v752_v0 }
  0x33   :  { %631 = vmatpush3.bf16.msra.mxu0 %v630_v50 }
  0x34   :  { %655 = vmatpush3.bf16.msra.mxu1 %v654_v51  ;;  %656 = vmatprep.subr.bf16.mxu0 %v752_v0 }
  0xa3   :  { %v39_v54 = vpop.xlane.xlu0 %38 }
  0xa4   :  { %v40_v55 = vmax.f32 %v39_v54, 1e-24  ;;  %v375_v54 = vld [vmem:[#allocation5] sm:$0xff] }
  0xa6   :  { %691 = vrsqrt.f32 %v40_v55 }
  0xac   :  { %v345_v30 = vpop.permute.xlu0 %344 }
  0xad   :  { %vm346_vm2 = vcmp.eq.s32.totalorder %v852_v29, %v345_v30 }
  0xb0   :  { %v692_v58 = vpop.eup %691 }
  0xb1   :  { %v42_v60 = vmul.f32 %v692_v58, %v800_v1  ;;  %v666_v1 = vpack.c.bf16 %v248_v6, %v247_v5 }
  0xb3   :  { %536 = vmatmul.mubr.f32.vlgmr.msra.gmra.mrb[0].mxu0 %v42_v60  ;;  %571 = vmatmul.mubr.f32.vlgmr.msra.gmra.mrb[0].mxu1 %v42_v60 }
  0xb4   :  { %658 = vmatpush3.bf16.msra.mxu0 %v657_v59  ;;  %605 = vmatprep.mubr.msk.f32.mxu0 %vm754_vm1, %v753_v41 }
  0xb5   :  { %659 = vmatprep.subr.bf16.mxu0 %v752_v0 }
  0xb8   :  { %661 = vmatpush3.bf16.msra.mxu0 %v660_v63 }
  0xb9   :  { %662 = vmatprep.subr.bf16.mxu0 %v752_v0 }
  0xbc   :  { %664 = vmatpush3.bf16.msra.mxu0 %v663_v4 }
  0xbd   :  { %665 = vmatprep.subr.bf16.mxu0 %v752_v0 }
  0xc0   :  { %667 = vmatpush3.bf16.msra.mxu0 %v666_v1 }
  0xc1   :  { %668 = vmatprep.subr.bf16.mxu0 %v752_v0 }
  0xc4   :  { %670 = vmatpush3.bf16.msra.mxu0 %v669_v9  ;;  %v395_v9 = vld [vmem:[#allocation4] sm:$0xff] }
  0xc5   :  { %671 = vmatprep.subr.bf16.mxu0 %v752_v0 }
  0xc8   :  { %673 = vmatpush3.bf16.msra.mxu0 %v672_v12 }
  0xc9   :  { %674 = vmatprep.subr.bf16.mxu0 %v752_v0 }
  0xcc   :  { %676 = vmatpush3.bf16.msra.mxu0 %v675_v15 }
  0xcd   :  { %677 = vmatprep.subr.bf16.mxu0 %v752_v0  ;;  %v450_v0 = vld [vmem:[%s883_s2 + $0x2] ss:$0 sm:$0xff]  ;;  %s757_s2 = smov [#allocation9]  }
  0xce   :  { %s437_s10 = sshll.u32 %s757_s2, 4  ;;  %s438_s10 = int_to_ptr.vmem [resolvable:$true] %s437_s10 }
  0xcf   :  { %s723_s11 = scalar_lea.vmem %s438_s10, 128  ;;  %p728_p9 = scmp.lt.s32.totalorder %s438_s10, %s438_s10 }
  0xd0   :  { %679 = vmatpush3.bf16.msra.mxu0 %v678_v18  ;;  %p724_p8 = scmp.ne.s32.totalorder %s438_s10, %s723_s11  ;;  %p729_p10 = scmp.lt.s32.totalorder %s723_s11, %s723_s11 }
  0xd2   :  { %p730_p11 = por %p729_p10, %p728_p9 }
  0xd3   :  { %606 = vmatmul.mubr.f32.vlgmr.msra.gmra.mrb[2].mxu0 %v42_v60  ;;  %v383_v60 = vld [vmem:[#allocation3] sm:$0xff] }
  0xd4   :  { %p731_p12 = pnand %p730_p11, %p724_p8 }
 0x186   :  { %v131_v21 = vpop.f32.mrb[0].mxu0  ;;  %v226_v22 = vpop.f32.mrb[0].mxu1 }
 0x187   :  { %v142_v23 = vmul.f32 %v446_v19, %v131_v21  ;;  %v238_v24 = vmul.f32 %v448_v20, %v226_v22  ;;  %v537_v25 = vpop.f32.mrb[1].mxu0  ;;  %v572_v26 = vpop.f32.mrb[1].mxu1 }
 0x189   :  { %v239_v27 = vmax.f32 %v142_v23, %v238_v24 }
 0x1a6   :  { %v323_v31 = vpop.f32.mrb[2].mxu0 }
 0x1a7   :  { %v335_v32 = vmul.f32 %v450_v0, %v323_v31  ;;  %v607_v33 = vpop.f32.mrb[3].mxu0 }
 0x1a9   :  { %v336_v34 = vmax.f32 %v239_v27, %v335_v32 }
 0x1ab   :  { %v347_v35 = vsel %vm346_vm2, %v336_v34, 0.0 }
 0x1ac   :  { %348 = vadd.xlane.f32.xlu1 %v347_v35 }
 0x239   :  { %v349_v37 = vpop.xlane.xlu1 %348 }
 0x23a   :  { %v350_v38 = vmul.f32 %v349_v37, %v349_v37  ;;  %v361_v48 = vmul.f32 0.9689124, %v349_v37  ;;  %vm364_vm7 = vcmp.gt.f32.partialorder %v349_v37, 0.0 }
 0x23c   :  { %v351_v39 = vsub.f32 1.0, %v350_v38 }
 0x23e   :  { %v352_v40 = vmax.f32 %v351_v39, 0.0 }
 0x240   :  { %v353_v42 = vmin.f32 %v352_v40, 1.0 }
 0x242   :  { %693 = vrsqrt.f32 %v353_v42  ;;  %vm356_vm3 = vcmp.eq.f32.partialorder %v353_v42, inf  ;;  %v359_v45 = vand.u32 2147483648, %v353_v42  ;;  %vm358_vm4 = vcmp.eq.f32.partialorder %v353_v42, 0.0 }
 0x24c   :  { %v694_v43 = vpop.eup %693 }
 0x24d   :  { %v355_v44 = vmul.f32 %v694_v43, %v353_v42 }
 0x24f   :  { %v357_v46 = vsel %vm356_vm3, %v353_v42, %v355_v44 }
 0x250   :  { %v360_v47 = vsel %vm358_vm4, %v359_v45, %v357_v46 }
 0x251   :  { %v362_v49 = vmul.f32 0.24740396, %v360_v47 }
 0x253   :  { %v363_v50 = vsub.f32 %v361_v48, %v362_v49 }
 0x255   :  { %v365_v51 = vsel %vm364_vm7, %v363_v50, %v349_v37 }
 0x256   :  { %v366_v53 = vsel %vm346_vm2, %v365_v51, %v336_v34  ;;  %v376_v55 = vmul.f32 32.0, %v365_v51 }
 0x257   :  { %v367_v56 = vmul.f32 32.0, %v366_v53 }
 0x258   :  { %v377_v57 = vsel %vm374_vm8, %v376_v55, 0.0 }
 0x259   :  { %v369_v58 = vsel %vm368_vm9, %v367_v56, -1e+30  ;;  %v378_v59 = vadd.f32 %v377_v57, %v375_v54 }
 0x25a   :  { %381 = vmax.xlane.f32.xlu1 %v369_v58 }
 0x25b   :  { %380 = vst.msk [vmem:[#allocation5] sm:$0xff] %vm44_vm0, %v378_v59 }
 0x262   :  { %v411_v2 = vld [vmem:[#allocation5] sm:$0xff] }
 0x2e7   :  { %v382_v52 = vpop.xlane.xlu1 %381 }
 0x2e8   :  { %v384_v61 = vmax.f32 %v383_v60, %v382_v52 }
 0x2ea   :  { %v396_v62 = vsub.f32 %v383_v60, %v384_v61  ;;  %402 = vst.msk [vmem:[#allocation3] sm:$0xff] %vm44_vm0, %v384_v61  ;;  %387 = vperm.xlu1 %690, %v384_v61  }
 0x2ec   :  { %v397_v7 = vmul.f32 1.442695, %v396_v62 }
 0x2f1   :  { %v406_v63 = vld [vmem:[#allocation3] sm:$0xff] }
 0x2f2   :  { %vm413_vm10 = vcmp.ge.f32.partialorder %v411_v2, %v406_v63 }
 0x2f3   :  { %v451_v3 = vsel %vm413_vm10, 1.0, %v753_v41 }
 0x2f4   :  { %420 = vperm.xlu0 %689, %v451_v3  }
 0x369   :  { %v388_v4 = vpop.permute.xlu1 %387 }
 0x36a   :  { %v390_v5 = vsub.f32 %v369_v58, %v388_v4 }
 0x36c   :  { %v391_v6 = vmul.f32 1.442695, %v390_v5 }
 0x36e   :  { %695 = vpow2.f32 %v391_v6 }
 0x36f   :  { %697 = vpow2.f32 %v397_v7 }
 0x373   :  { %v421_v17 = vpop.permute.xlu0 %420 }
 0x374   :  { %v423_v18 = vsel %vm417_vm11, %v421_v17, 0.0 }
 0x378   :  { %v696_v1 = vpop.eup %695 }
 0x379   :  { %393 = vadd.xlane.f32.xlu1 %v696_v1  ;;  %v698_v8 = vpop.eup %697 }
 0x37a   :  { %v399_v10 = vmul.f32 %v698_v8, %v395_v9 }
 0x406   :  { %v394_v11 = vpop.xlane.xlu1 %393 }
 0x407   :  { %v400_v12 = vadd.f32 %v399_v10, %v394_v11 }
 0x409   :  { %401 = vst.msk [vmem:[#allocation4] sm:$0xff] %vm44_vm0, %v400_v12 }
 0x410   :  { %v407_v13 = vld [vmem:[#allocation4] sm:$0xff] }
 0x411   :  { %699 = vlog2.f32 %v407_v13 }
 0x41b   :  { %v700_v14 = vpop.eup %699 }
 0x41c   :  { %v409_v41 = vmul.f32 0.6931472, %v700_v14 }
 0x41e   :  { %v410_v15 = vadd.f32 %v409_v41, %v406_v63 }
 0x420   :  { %v412_v16 = vsub.f32 %v410_v15, %v411_v2 }
 0x422   :  { %426 = vperm.xlu0 %689, %v412_v16  }
 0x4a1   :  { %v427_v19 = vpop.permute.xlu0 %426 }
 0x4a2   :  { %v429_v20 = vsel %vm416_vm12, %v427_v19, %v423_v18 }
 0x4a3   :  { %430 = vst [vmem:[#allocation9] sm:$0xff] %v429_v20 }
 0x4a4   :  { %734 = shalt.err (!%p731_p12)
}
 0x4a5   :  { %s735_s14 = scalar_lea.hbm %s885_s4, 128 }
 0x4a6   :  { %p736_p13 = scmp.ne.s32.totalorder %s885_s4, %s735_s14  ;;  %p739_p0 = scmp.lt.u32.totalorder %s735_s14, %s885_s4 }
 0x4a8   :  { %p741_p1 = pnand %p739_p0, %p736_p13 }
 0x4aa   :  { %744 = shalt.err (!%p741_p1)
}
 0x4ab   :  { %440 = dma.vmem_to_hbm [thread:$0]  %s438_s10, 128, %s885_s4, [#allocation8]  }
 0x4ac   :  { %747 = dma.done.wait [#allocation8], 128  }
 0x4ad   :  { %748 = vsyncadd [#allocation8], 4294967168 }
 0x4ae   :  { %444 = vsyncpa [#allocation7], 1 }
 0x4af   :  { %445 = vsyncpa [#allocation8], 1 }

</bundles_post_ra>
